<compile_context>
chip_gen: v7x
topology: tpu7x:2x2x1
jax: 0.10.0
libtpu: 0.0.40
codegen_flags: <defaults>
</compile_context>

<pallas_src>
import jax
import jax.numpy as jnp
from jax.experimental import pallas as pl
from jax.experimental.pallas import tpu as pltpu


# ---------------------------------------------------------------------------
# Pallas kernel: one HBM -> HBM DMA, zero VMEM, shape/dtype agnostic.
# ---------------------------------------------------------------------------
def _dma_copy_kernel(src_hbm_ref, dst_hbm_ref, copy_sem):
    cp = pltpu.make_async_copy(src_hbm_ref, dst_hbm_ref, copy_sem)
    cp.start()
    cp.wait()


def components_forward_copy(
    components: jax.Array,
    *,
    use_pallas: bool | None = None,
    min_pallas_bytes: int = 1 << 20,
) -> jax.Array:
    """forward() that materializes a distinct copy of the components tensor."""
    nbytes = int(components.size) * components.dtype.itemsize

    if use_pallas is None:
        # For tiny parameter tensors the fixed kernel-launch overhead dwarfs
        # the copy itself; let XLA emit (and possibly fuse) the copy.
        use_pallas = nbytes >= min_pallas_bytes

    if not use_pallas:
        return jnp.copy(components)

    return pl.pallas_call(
        _dma_copy_kernel,
        out_shape=jax.ShapeDtypeStruct(components.shape, components.dtype),
        in_specs=[pl.BlockSpec(memory_space=pl.ANY)],
        out_specs=pl.BlockSpec(memory_space=pl.ANY),
        scratch_shapes=[pltpu.SemaphoreType.DMA(())],
        cost_estimate=pl.CostEstimate(
            flops=0, transcendentals=0, bytes_accessed=2 * nbytes
        ),
    )(components)


# ---------------------------------------------------------------------------
# Minimal JAX port of the prototorch Components module.
# ---------------------------------------------------------------------------
class ComponentsJAX:
    """Components is a set of learnable tensors (parameter container)."""

    def __init__(self, initialized_components: jax.Array):
        # Parameter(initialized_components)
        self._components = initialized_components

    @property
    def components(self) -> jax.Array:
        return self._components

    def forward(self, copy: bool = False, **copy_kwargs) -> jax.Array:
        # PyTorch forward() returns the Parameter itself: the direct return is
        # the exact, guaranteed zero-cost equivalent.  copy=True produces a
        # distinct buffer via a single HBM->HBM DMA Pallas kernel.
        if copy:
            return components_forward_copy(self._components, **copy_kwargs)
        return self._components

    def __call__(self, copy: bool = False, **copy_kwargs) -> jax.Array:
        return self.forward(copy=copy, **copy_kwargs)

    def extra_repr(self) -> str:
        return f"components.shape: {tuple(self._components.shape)}"


if __name__ == "__main__":
    key = jax.random.PRNGKey(0)
    num_components, feature_dim = 8, 32
    init_components = jax.random.normal(
        key, (num_components, feature_dim), dtype=jnp.float32
    )

    module = ComponentsJAX(initialized_components=init_components)

    # Default forward: zero-cost pass-through (matches Parameter return).
    out_fwd = jax.block_until_ready(module())
    assert out_fwd.shape == (num_components, feature_dim)
    assert out_fwd.dtype == jnp.float32
    assert bool(jnp.allclose(out_fwd, init_components)), "forward mismatch"

    # Explicit-copy forward: force the Pallas HBM->HBM DMA kernel even for
    # this small demo tensor so the kernel is actually exercised.
    out_copy = jax.block_until_ready(module(copy=True, use_pallas=True))
    assert out_copy.shape == (num_components, feature_dim)
    assert out_copy.dtype == jnp.float32
    assert bool(jnp.allclose(out_copy, init_components)), "copy forward mismatch"

    # Ragged / non-128-aligned shape: the DMA path needs no pad or reshape.
    k2, k3 = jax.random.split(jax.random.PRNGKey(0))
    x_ragged = jax.random.normal(k2, (5, 7), dtype=jnp.float32)
    y_ragged = jax.block_until_ready(
        components_forward_copy(x_ragged, use_pallas=True)
    )
    assert bool(jnp.allclose(y_ragged, x_ragged)), "ragged copy mismatch"

    # Auto path for a small tensor: falls back to a plain XLA copy.
    x_small = jax.random.normal(k3, (16, 16), dtype=jnp.float32)
    y_small = jax.block_until_ready(components_forward_copy(x_small))
    assert bool(jnp.allclose(y_small, x_small)), "small-tensor copy mismatch"

    print("KERNEL_OK")
</pallas_src>

<mosaic_0001>
module attributes {stable_mosaic.version = 11 : i64} {
  func.func @_dma_copy_kernel(%arg0: memref<8x32xf32, #tpu.memory_space<any>>, %arg1: memref<8x32xf32, #tpu.memory_space<any>>, %arg2: memref<!tpu.dma_semaphore, #tpu.memory_space<semaphore_mem>>) attributes {dimension_semantics = [], scalar_prefetch = 0 : i64, scratch_operands = 1 : i64, tpu.core_type = #tpu.core_type<tc>} {
    tpu.enqueue_dma source(%arg0 : memref<8x32xf32, #tpu.memory_space<any>>) target(%arg1 : memref<8x32xf32, #tpu.memory_space<any>>) target_semaphore(%arg2 : memref<!tpu.dma_semaphore, #tpu.memory_space<semaphore_mem>>)
    tpu.wait_dma2 semaphore(%arg2 : memref<!tpu.dma_semaphore, #tpu.memory_space<semaphore_mem>>) src(%arg0 : memref<8x32xf32, #tpu.memory_space<any>>) dst(%arg1 : memref<8x32xf32, #tpu.memory_space<any>>)
    return
  }
}

</mosaic_0001>

<bundles_post_ra>
// kernel: tpu_custom_call.1
= control target key start
LH: loop header
LB: loop body
LE: loop exit
PB: predicated region body
PF: predicated region fallthrough
CT: control target
= control target key end

     0   :  { %s34_s6 = smov [#allocation2]   ;;  %s35_s7 = smov [#allocation3]   ;;  %s53_s0 = inlined_call_operand.hbm [shape: f32[8,32], index: 0, kind: input, shape index: {}]   ;;  %s54_s1 = inlined_call_operand.hbm [shape: f32[8,32], index: 1, kind: output, shape index: {}]  }
   0x1   :  { %s36_s8 = smov 0  }
   0x2   :  { %18 = dma.general %s53_s0, 128, %s54_s1, %s34_s6, %s35_s7, [#allocation4], %s36_s8, 0  }
   0x3   :  { %32 = dma.done.wait [#allocation2], 128 }
   0x4   :  { %33 = vsyncadd [#allocation2], 4294967168 }
   0x5   :  { %22 = vsyncmov [#allocation2] }
   0x8   :  { %s23_s13 = vpop.sfrf %22 }
   0x9   :  { %p28_p0 = scmp.ne.s32.totalorder %s23_s13, 0 }
   0xb   :  { %27 = shalt.err (%p28_p0)  }

</bundles_post_ra>
